<compile_context>
chip_gen: v7x
topology: tpu7x:2x2x1
jax: 0.10.0
libtpu: 0.0.40
codegen_flags: <defaults>
</compile_context>

<pallas_src>
import jax
import jax.numpy as jnp
from jax.experimental import pallas as pl
from jax.experimental.pallas import tpu as pltpu


# ----------------------------------------------------------------------------
# Kernel: out[b, n0:n0+nt] = msa[b, n0:n0+nt] @ W + (emb_q[seq[b]] + bias)
# ----------------------------------------------------------------------------
def extra_emb_kernel(msa_ref, w_ref, seqb_ref, out_ref):
    # msa_ref : (1, n_tile, L, d_init)
    # w_ref   : (d_init, d_msa)      -- resident across the whole grid
    # seqb_ref: (1, L, d_msa)        -- seq embedding with bias folded in,
    #                                   resident across the inner (n) grid axis
    # out_ref : (1, n_tile, L, d_msa)
    w = w_ref[...]
    seqb = seqb_ref[0]                           # (L, d_msa)
    n_tile = msa_ref.shape[1]
    # Static unroll over the folded MSA rows: one 2-D MXU matmul per row-block.
    for n in range(n_tile):
        y = jnp.dot(msa_ref[0, n], w, preferred_element_type=jnp.float32)
        out_ref[0, n] = (y + seqb).astype(out_ref.dtype)


def _pick_n_tile(N, L, d_init, d_msa, in_bytes, out_bytes,
                 vmem_budget=10 * 1024 * 1024, max_unroll=32):
    """Largest divisor of N whose double-buffered in+out block fits the budget."""
    per_n = 2 * L * (d_init * in_bytes + d_msa * out_bytes)   # 2x = double buffer
    best = 1
    for cand in range(1, N + 1):
        if N % cand == 0 and cand <= max_unroll and cand * per_n <= vmem_budget:
            best = cand
    return best


def extra_emb_forward(msa, seq_emb_biased, weight, *, n_tile=None, out_dtype=None):
    """msa: (B, N, L, d_init); seq_emb_biased: (B, L, d_msa) = emb_q[seq] + bias."""
    B, N, L, d_init = msa.shape
    d_msa = weight.shape[1]
    out_dtype = out_dtype or msa.dtype

    in_bytes = jnp.dtype(msa.dtype).itemsize
    out_bytes = jnp.dtype(out_dtype).itemsize
    if n_tile is None:
        n_tile = _pick_n_tile(N, L, d_init, d_msa, in_bytes, out_bytes)
    assert N % n_tile == 0, "n_tile must divide N"

    grid = (B, N // n_tile)

    cost = pl.CostEstimate(
        flops=2 * B * N * L * d_init * d_msa,
        transcendentals=0,
        bytes_accessed=(msa.size * in_bytes
                        + seq_emb_biased.size * jnp.dtype(seq_emb_biased.dtype).itemsize
                        + weight.size * jnp.dtype(weight.dtype).itemsize
                        + B * N * L * d_msa * out_bytes),
    )

    return pl.pallas_call(
        extra_emb_kernel,
        out_shape=jax.ShapeDtypeStruct((B, N, L, d_msa), out_dtype),
        grid_spec=pl.GridSpec(
            grid=grid,
            in_specs=[
                # msa: one batch, n_tile MSA rows, full L, full d_init per step
                pl.BlockSpec((1, n_tile, L, d_init), lambda b, n: (b, n, 0, 0)),
                # weight: constant block index -> resident in VMEM
                pl.BlockSpec((d_init, d_msa), lambda b, n: (0, 0)),
                # seq embedding (+bias): depends only on outer axis b -> resident
                # across the inner n axis (no redundant refetch per n)
                pl.BlockSpec((1, L, d_msa), lambda b, n: (b, 0, 0)),
            ],
            out_specs=pl.BlockSpec((1, n_tile, L, d_msa),
                                   lambda b, n: (b, n, 0, 0)),
        ),
        compiler_params=pltpu.CompilerParams(
            dimension_semantics=("parallel", "parallel")),
        cost_estimate=cost,
    )(msa, weight, seq_emb_biased)


# ----------------------------------------------------------------------------
# Parameter init (deterministic, matches module's reset_parameter semantics)
# ----------------------------------------------------------------------------
def init_params(key, naatokens, d_init, d_msa):
    k_w, k_emb = jax.random.split(key)
    # init_lecun_normal on nn.Linear -> lecun-normal weight (fan_in = d_init)
    std = 1.0 / jnp.sqrt(jnp.float32(d_init))
    # stored as (d_init, d_msa) so kernel does x @ W (equivalent to PyTorch x @ W.T)
    weight = std * jax.random.normal(k_w, (d_init, d_msa), dtype=jnp.float32)
    bias = jnp.zeros((d_msa,), dtype=jnp.float32)            # nn.init.zeros_
    # nn.Embedding default init: N(0, 1)
    emb_q = jax.random.normal(k_emb, (naatokens, d_msa), dtype=jnp.float32)
    return weight, bias, emb_q


if __name__ == "__main__":
    # Small synthetic sizes consistent with the module
    NAATOKENS = 32
    D_INIT = NAATOKENS - 1 + 4          # 35, as in the module's default d_init path
    D_MSA = 128                         # lane-dense (multiple of 128); module default 256
    B, N, L = 2, 4, 16

    key = jax.random.PRNGKey(0)
    k_p, k_msa, k_seq = jax.random.split(key, 3)

    weight, bias, emb_q = init_params(k_p, NAATOKENS, D_INIT, D_MSA)

    msa = jax.random.normal(k_msa, (B, N, L, D_INIT), dtype=jnp.float32)
    seq = jax.random.randint(k_seq, (B, L), 0, NAATOKENS, dtype=jnp.int32)
    idx = jnp.arange(L, dtype=jnp.int32)[None, :].repeat(B, axis=0)  # unused by forward

    # Embedding lookup (gather) + bias fold done as JAX glue; the hot path
    # (matmul + broadcast add) happens inside the Pallas kernel.
    seq_emb_biased = jnp.take(emb_q, seq, axis=0) + bias     # (B, L, D_MSA)

    out = extra_emb_forward(msa, seq_emb_biased, weight)
    out = jax.block_until_ready(out)

    # Reference check (plain JAX) for correctness
    ref = msa @ weight + bias + jnp.take(emb_q, seq, axis=0)[:, None, :, :]
    assert out.shape == (B, N, L, D_MSA)
    assert jnp.allclose(out, ref, atol=1e-5, rtol=1e-5)

    print("KERNEL_OK")
</pallas_src>

<mosaic_0001>
module attributes {stable_mosaic.version = 11 : i64} {
  func.func @extra_emb_kernel(%arg0: i32, %arg1: i32, %arg2: memref<1x4x16x35xf32, #tpu.memory_space<vmem>>, %arg3: memref<35x128xf32, #tpu.memory_space<vmem>>, %arg4: memref<1x16x128xf32, #tpu.memory_space<vmem>>, %arg5: memref<1x4x16x128xf32, #tpu.memory_space<vmem>>) attributes {dimension_semantics = [#tpu.dimension_semantics<parallel>, #tpu.dimension_semantics<parallel>], iteration_bounds = array<i64: 2, 1>, scalar_prefetch = 0 : i64, scratch_operands = 0 : i64, tpu.core_type = #tpu.core_type<tc>, window_params = [{transform_indices = @transform_0, window_bounds = array<i64: 1, 4, 16, 35>}, {pipeline_mode = #tpu.pipeline_mode<synchronous>, transform_indices = @transform_1, window_bounds = array<i64: 35, 128>}, {transform_indices = @transform_2, window_bounds = array<i64: 1, 16, 128>}, {transform_indices = @transform_3, window_bounds = array<i64: 1, 4, 16, 128>}]} {
    %c0 = arith.constant 0 : index
    %c0_0 = arith.constant 0 : index
    %0 = vector.load %arg3[%c0, %c0_0] : memref<35x128xf32, #tpu.memory_space<vmem>>, vector<35x128xf32>
    %c0_1 = arith.constant 0 : index
    %c0_2 = arith.constant 0 : index
    %c0_3 = arith.constant 0 : index
    %1 = vector.load %arg4[%c0_1, %c0_2, %c0_3] : memref<1x16x128xf32, #tpu.memory_space<vmem>>, vector<1x16x128xf32>
    %2 = vector.shape_cast %1 : vector<1x16x128xf32> to vector<16x128xf32>
    %c0_4 = arith.constant 0 : index
    %c0_5 = arith.constant 0 : index
    %c0_6 = arith.constant 0 : index
    %c0_7 = arith.constant 0 : index
    %3 = vector.load %arg2[%c0_4, %c0_5, %c0_6, %c0_7] : memref<1x4x16x35xf32, #tpu.memory_space<vmem>>, vector<1x1x16x35xf32>
    %4 = vector.shape_cast %3 : vector<1x1x16x35xf32> to vector<16x35xf32>
    %cst = arith.constant dense<0.000000e+00> : vector<16x128xf32>
    %5 = tpu.matmul %4, %0, %cst {dimension_numbers = #tpu.dot_dimension_numbers<[1], [0], [0], [1], [0, 0, 1, 1], [], []>} : vector<16x35xf32>, vector<35x128xf32>, vector<16x128xf32> -> vector<16x128xf32>
    %6 = arith.addf %5, %2 : vector<16x128xf32>
    %c0_8 = arith.constant 0 : index
    %c0_9 = arith.constant 0 : index
    %c0_10 = arith.constant 0 : index
    %c0_11 = arith.constant 0 : index
    %7 = vector.load %arg5[%c0_8, %c0_9, %c0_10, %c0_11] : memref<1x4x16x128xf32, #tpu.memory_space<vmem>>, vector<1x1x16x128xf32>
    %8 = vector.shape_cast %7 : vector<1x1x16x128xf32> to vector<16x128xf32>
    %9 = vector.shape_cast %6 : vector<16x128xf32> to vector<1x1x16x128xf32>
    tpu.vector_store %arg5[%c0_8, %c0_9, %c0_10, %c0_11], %9 {strides = array<i32>} : memref<1x4x16x128xf32, #tpu.memory_space<vmem>>, vector<1x1x16x128xf32>,
    %c0_12 = arith.constant 0 : index
    %c1 = arith.constant 1 : index
    %c0_13 = arith.constant 0 : index
    %c0_14 = arith.constant 0 : index
    %10 = vector.load %arg2[%c0_12, %c1, %c0_13, %c0_14] : memref<1x4x16x35xf32, #tpu.memory_space<vmem>>, vector<1x1x16x35xf32>
    %11 = vector.shape_cast %10 : vector<1x1x16x35xf32> to vector<16x35xf32>
    %cst_15 = arith.constant dense<0.000000e+00> : vector<16x128xf32>
    %12 = tpu.matmul %11, %0, %cst_15 {dimension_numbers = #tpu.dot_dimension_numbers<[1], [0], [0], [1], [0, 0, 1, 1], [], []>} : vector<16x35xf32>, vector<35x128xf32>, vector<16x128xf32> -> vector<16x128xf32>
    %13 = arith.addf %12, %2 : vector<16x128xf32>
    %c0_16 = arith.constant 0 : index
    %c1_17 = arith.constant 1 : index
    %c0_18 = arith.constant 0 : index
    %c0_19 = arith.constant 0 : index
    %14 = vector.load %arg5[%c0_16, %c1_17, %c0_18, %c0_19] : memref<1x4x16x128xf32, #tpu.memory_space<vmem>>, vector<1x1x16x128xf32>
    %15 = vector.shape_cast %14 : vector<1x1x16x128xf32> to vector<16x128xf32>
    %16 = vector.shape_cast %13 : vector<16x128xf32> to vector<1x1x16x128xf32>
    tpu.vector_store %arg5[%c0_16, %c1_17, %c0_18, %c0_19], %16 {strides = array<i32>} : memref<1x4x16x128xf32, #tpu.memory_space<vmem>>, vector<1x1x16x128xf32>,
    %c0_20 = arith.constant 0 : index
    %c2 = arith.constant 2 : index
    %c0_21 = arith.constant 0 : index
    %c0_22 = arith.constant 0 : index
    %17 = vector.load %arg2[%c0_20, %c2, %c0_21, %c0_22] : memref<1x4x16x35xf32, #tpu.memory_space<vmem>>, vector<1x1x16x35xf32>
    %18 = vector.shape_cast %17 : vector<1x1x16x35xf32> to vector<16x35xf32>
    %cst_23 = arith.constant dense<0.000000e+00> : vector<16x128xf32>
    %19 = tpu.matmul %18, %0, %cst_23 {dimension_numbers = #tpu.dot_dimension_numbers<[1], [0], [0], [1], [0, 0, 1, 1], [], []>} : vector<16x35xf32>, vector<35x128xf32>, vector<16x128xf32> -> vector<16x128xf32>
    %20 = arith.addf %19, %2 : vector<16x128xf32>
    %c0_24 = arith.constant 0 : index
    %c2_25 = arith.constant 2 : index
    %c0_26 = arith.constant 0 : index
    %c0_27 = arith.constant 0 : index
    %21 = vector.load %arg5[%c0_24, %c2_25, %c0_26, %c0_27] : memref<1x4x16x128xf32, #tpu.memory_space<vmem>>, vector<1x1x16x128xf32>
    %22 = vector.shape_cast %21 : vector<1x1x16x128xf32> to vector<16x128xf32>
    %23 = vector.shape_cast %20 : vector<16x128xf32> to vector<1x1x16x128xf32>
    tpu.vector_store %arg5[%c0_24, %c2_25, %c0_26, %c0_27], %23 {strides = array<i32>} : memref<1x4x16x128xf32, #tpu.memory_space<vmem>>, vector<1x1x16x128xf32>,
    %c0_28 = arith.constant 0 : index
    %c3 = arith.constant 3 : index
    %c0_29 = arith.constant 0 : index
    %c0_30 = arith.constant 0 : index
    %24 = vector.load %arg2[%c0_28, %c3, %c0_29, %c0_30] : memref<1x4x16x35xf32, #tpu.memory_space<vmem>>, vector<1x1x16x35xf32>
    %25 = vector.shape_cast %24 : vector<1x1x16x35xf32> to vector<16x35xf32>
    %cst_31 = arith.constant dense<0.000000e+00> : vector<16x128xf32>
    %26 = tpu.matmul %25, %0, %cst_31 {dimension_numbers = #tpu.dot_dimension_numbers<[1], [0], [0], [1], [0, 0, 1, 1], [], []>} : vector<16x35xf32>, vector<35x128xf32>, vector<16x128xf32> -> vector<16x128xf32>
    %27 = arith.addf %26, %2 : vector<16x128xf32>
    %c0_32 = arith.constant 0 : index
    %c3_33 = arith.constant 3 : index
    %c0_34 = arith.constant 0 : index
    %c0_35 = arith.constant 0 : index
    %28 = vector.load %arg5[%c0_32, %c3_33, %c0_34, %c0_35] : memref<1x4x16x128xf32, #tpu.memory_space<vmem>>, vector<1x1x16x128xf32>
    %29 = vector.shape_cast %28 : vector<1x1x16x128xf32> to vector<16x128xf32>
    %30 = vector.shape_cast %27 : vector<16x128xf32> to vector<1x1x16x128xf32>
    tpu.vector_store %arg5[%c0_32, %c3_33, %c0_34, %c0_35], %30 {strides = array<i32>} : memref<1x4x16x128xf32, #tpu.memory_space<vmem>>, vector<1x1x16x128xf32>,
    return
  }
  func.func @transform_0(%arg0: i32, %arg1: i32) -> (i32, i32, i32, i32) {
    %c0_i32 = arith.constant 0 : i32
    %c0_i32_0 = arith.constant 0 : i32
    %c0_i32_1 = arith.constant 0 : i32
    return %arg0, %arg1, %c0_i32, %c0_i32_0 : i32, i32, i32, i32
  }
  func.func @transform_1(%arg0: i32, %arg1: i32) -> (i32, i32) {
    %c0_i32 = arith.constant 0 : i32
    %c0_i32_0 = arith.constant 0 : i32
    %c0_i32_1 = arith.constant 0 : i32
    return %c0_i32, %c0_i32_0 : i32, i32
  }
  func.func @transform_2(%arg0: i32, %arg1: i32) -> (i32, i32, i32) {
    %c0_i32 = arith.constant 0 : i32
    %c0_i32_0 = arith.constant 0 : i32
    %c0_i32_1 = arith.constant 0 : i32
    return %arg0, %c0_i32, %c0_i32_0 : i32, i32, i32
  }
  func.func @transform_3(%arg0: i32, %arg1: i32) -> (i32, i32, i32, i32) {
    %c0_i32 = arith.constant 0 : i32
    %c0_i32_0 = arith.constant 0 : i32
    %c0_i32_1 = arith.constant 0 : i32
    return %arg0, %arg1, %c0_i32, %c0_i32_0 : i32, i32, i32, i32
  }
}

</mosaic_0001>

<bundles_post_ra>
// kernel: tpu_custom_call.1
= control target key start
LH: loop header
LB: loop body
LE: loop exit
PB: predicated region body
PF: predicated region fallthrough
CT: control target
= control target key end

     0   :  { %8 = vsyncpa [#allocation3], 0  ;;  %s1513_s0 = inlined_call_operand.hbm [shape: f32[2,4,16,35], index: 0, kind: input, shape index: {}]   ;;  %s1514_s1 = inlined_call_operand.hbm [shape: f32[35,128], index: 1, kind: input, shape index: {}]   ;;  %s1515_s2 = inlined_call_operand.hbm [shape: f32[2,16,128], index: 2, kind: input, shape index: {}]   ;;  %s1516_s3 = inlined_call_operand.hbm [shape: f32[2,4,16,128], index: 3, kind: output, shape index: {}]  }
   0x1   :  { %10 = vsyncpa [#allocation3 + $0x1], 0 }
   0x2   :  { %11 = vsyncpa [#allocation6], 0 }
   0x3   :  { %12 = vsyncpa [#allocation4], 0 }
   0x4   :  { %14 = vsyncpa [#allocation4 + $0x1], 0  ;;  %s1204_s12 = smov 0   ;;  %s1206_s13 = smov 0  }
   0x5   :  { %s1208_s14 = smov 0   ;;  %s1210_s15 = smov 0  }
   0x6   :  { %s1212_s16 = smov 0   ;;  %s1214_s17 = smov 0  }
   0x7 LB: > { %s32_s18 = sadd.s32 1, %s1170_s16  ;;  %s41_s19 = sadd.s32 1, %s1162_s14  ;;  %s1174_s17 = sphi %s1214_s17, %s20_s17   ;;  %s1170_s16 = sphi %s1212_s16, %s1541_s16   ;;  %s1166_s15 = sphi %s1210_s15, %s1540_s15   ;;  %s1162_s14 = sphi %s1208_s14, %s1539_s14   ;;  %s1158_s13 = sphi %s1206_s13, %s1538_s13   ;;  %s1154_s12 = sphi %s1204_s12, %s1537_s12  }
   0x8   : > { %p34_p0 = scmp.ge.s32.totalorder %s32_s18, 2  ;;  %p48_p1 = scmp.ne.s32.totalorder %s1162_s14, %s1158_s13 }
   0x9   : > { %p49_p2 = scmp.eq.s32.totalorder %s1174_s17, 0  ;;  %p940_p6 = scmp.lt.s32.totalorder %s1174_s17, 2 }
   0xa   : > { %s1543_s18 = smov (%p34_p0, %s32_s18), 0  ;;  %s166_s22 = sand.u32 1, %s1174_s17  }
   0xb   : > { %p1244_p3 = por %p49_p2, %p48_p1  ;;  %s36_s21 = ssub.s32 %s1170_s16, %s1543_s18 }
   0xc   : > { %p39_p5 = scmp.eq.s32.totalorder %s36_s21, 0  ;;  %s168_s23 = sand.u32 1, %s1162_s14  }
   0xd   : > { %s759_s25 = sshll.u32 %s168_s23, 6  ;;  %s799_s26 = sshll.u32 %s1170_s16, 10 }
   0xe   : > { %s1255_s24 = scalar_select %p39_p5, %s1162_s14, %s41_s19  }
   0xf   : > { %s1261_s29 = scalar_lea.hbm %s1513_s0, %s799_s26  ;;  %s170_s30 = scalar_lea.vmem [#allocation2], %s759_s25 }
  0x10   : > { %s180_s4 = sshll.u32 %s170_s30, 4  ;;  %p1267_p7 = pnand %p940_p6, %p1244_p3  ;;  %s1263_s4 = int_to_ptr.vmem [resolvable:$true] %s180_s4 }
  0x11   : > { %s1271_s6 = sshll.u32 %s168_s23, 4  ;;  %s1273_s7 = scalar_lea.sflag [#allocation3], %s166_s22 }
  0x12   : > { %s996_s8 = scalar_lea.hbm %s1261_s29, 1024  ;;  %p998_p9 = pneg %p1267_p7 }
  0x13   : > { %p997_p8 = scmp.ne.s32.totalorder %s1261_s29, %s996_s8  ;;  %s1001_s11 = scalar_lea.hbm %s1513_s0, 2048 }
  0x14   : > { %p1002_p12 = scmp.lt.u32.totalorder %s1261_s29, %s1513_s0  ;;  %p1003_p13 = scmp.lt.u32.totalorder %s1001_s11, %s996_s8 }
  0x15   : > { %p999_p10 = pnand %p998_p9, %p997_p8  ;;  %p1005_p2 = scmp.lt.u32.totalorder %s996_s8, %s1261_s29 }
  0x16   : > { %p1004_p0 = por %p1003_p13, %p1002_p12 }
  0x17   : > { %p1000_p11 = pneg %p999_p10 }
  0x18   : > { %p1006_p3 = por %p1005_p2, %p1004_p0 }
  0x1a   : > { %p1007_p5 = pnand %p1006_p3, %p1000_p11 }
  0x1c   : > { %1010 = shalt.err (!%p1007_p5)
}
  0x1d   : > { %s1011_s21 = scalar_lea.vmem %s1263_s4, 1024  ;;  %s1176_s22 = smov [#allocation2]  }
  0x1e   : > { %p1012_p6 = scmp.ne.s32.totalorder %s1263_s4, %s1011_s21  ;;  %s1016_s23 = sshll.u32 %s1176_s22, 4  ;;  %s1017_s23 = int_to_ptr.vmem [resolvable:$false] %s1016_s23 }
  0x1f   : > { %s1018_s25 = scalar_lea.vmem %s1017_s23, 2048  ;;  %p1019_p4 = scmp.lt.s32.totalorder %s1263_s4, %s1017_s23 }
  0x20   : > { %p1014_p8 = pnand %p1012_p6, %p998_p9  ;;  %p1020_p12 = scmp.lt.s32.totalorder %s1018_s25, %s1011_s21 }
  0x22   : > { %p1015_p10 = pneg %p1014_p8  ;;  %p1021_p13 = por %p1020_p12, %p1019_p4 }
  0x24   : > { %p1022_p0 = pnand %p1021_p13, %p1015_p10 }
  0x26   : > { %1025 = shalt.err (!%p1022_p0)
}
  0x27   : > { %s1177_s26 = smov 128   ;;  %s1178_s27 = smov 8  }
  0x28   : > { %931 = dma.hbm_to_vmem [thread:$0]  (!%p1267_p7), %s1261_s29, 1024, %s1263_s4, %s1273_s7, %s1177_s26, %s1177_s26, %s1178_s27  }
  0x29   : > { %s194_s28 = scalar_lea.vmem [#allocation7], %s1271_s6  ;;  %s1306_s8 = sadd.s32 4294967295, %s1174_s17  }
  0x2a   : > { %s201_s30 = sshll.u32 %s194_s28, 4  ;;  %s755_s9 = sadd.s32 4294967294, %s1174_s17   ;;  %s1346_s30 = int_to_ptr.vmem [resolvable:$true] %s201_s30 }
  0x2b   : > { %p54_p4 = scmp.ne.s32.totalorder %s1158_s13, %s1154_s12  ;;  %p1517_p11 = scmp.eq.s32.totalorder %s1306_s8, 0 }
  0x2c   : > { %p127_p2 = scmp.eq.s32.totalorder %s1306_s8, 1  ;;  %p133_p3 = scmp.eq.s32.totalorder %s755_s9, 1 }
  0x2d   : > { %p1315_p5 = por %p1517_p11, %p54_p4  ;;  %p756_p6 = scmp.ge.s32.totalorder %s1174_s17, 1 }
  0x2e   : > { %p1323_p8 = por %p127_p2, %p48_p1  ;;  %p1327_p10 = por %p133_p3, %p54_p4 }
  0x2f   : > { %s1523_s10 = scalar_select %p1315_p5, 1, 0 }
  0x30   : > { %s1524_s29 = scalar_select %p1323_p8, 1, 0 }
  0x31   : > { %s1525_s4 = scalar_select %p1327_p10, 1, 0 }
  0x32   : > { %p140_p12 = scmp.lt.s32.totalorder %s1174_s17, 3  ;;  %s800_s6 = sshll.u32 %s1170_s16, 8 }
  0x33   : > { %s1179_s19 = smov [#allocation5]   ;;  %s1342_s23 = scalar_lea.hbm %s1515_s2, %s800_s6 }
  0x34   : > { %p1333_p13 = pnand %p756_p6, %p140_p12  ;;  %s1337_s20 = sshll.u32 %s1179_s19, 4  ;;  %s153_s20 = int_to_ptr.vmem [resolvable:$true] %s1337_s20 }
  0x35   : > { %s1026_s25 = scalar_lea.hbm %s1342_s23, 256  ;;  %s1031_s19 = scalar_lea.hbm %s1515_s2, 512 }
  0x36   : > { %s1526_s11 = scalar_select %p1333_p13, 1, 0 }
  0x37   : > { %p1027_p0 = scmp.ne.s32.totalorder %s1342_s23, %s1026_s25  ;;  %p1032_p3 = scmp.lt.u32.totalorder %s1342_s23, %s1515_s2 }
  0x38   : > { %p1033_p6 = scmp.lt.u32.totalorder %s1031_s19, %s1026_s25  ;;  %p1035_p11 = scmp.lt.u32.totalorder %s1026_s25, %s1342_s23 }
  0x39   : > { %p1029_p4 = pnand %p1027_p0, %p998_p9 }
  0x3a   : > { %p1034_p12 = por %p1033_p6, %p1032_p3 }
  0x3b   : > { %p1030_p2 = pneg %p1029_p4 }
  0x3c   : > { %p1036_p1 = por %p1035_p11, %p1034_p12 }
  0x3e   : > { %p1037_p10 = pnand %p1036_p1, %p1030_p2 }
  0x40   : > { %1040 = shalt.err (!%p1037_p10)
}
  0x41   : > { %s1041_s22 = scalar_lea.vmem %s1346_s30, 256  ;;  %s1180_s28 = smov [#allocation7]  }
  0x42   : > { %p1042_p0 = scmp.ne.s32.totalorder %s1346_s30, %s1041_s22  ;;  %s1046_s9 = sshll.u32 %s1180_s28, 4  ;;  %s1047_s9 = int_to_ptr.vmem [resolvable:$false] %s1046_s9 }
  0x43   : > { %s1048_s6 = scalar_lea.vmem %s1047_s9, 512  ;;  %p1049_p5 = scmp.lt.s32.totalorder %s1346_s30, %s1047_s9 }
  0x44   : > { %p1044_p4 = pnand %p1042_p0, %p998_p9  ;;  %p1050_p3 = scmp.lt.s32.totalorder %s1048_s6, %s1041_s22 }
  0x46   : > { %p1045_p8 = pneg %p1044_p4  ;;  %p1051_p6 = por %p1050_p3, %p1049_p5 }
  0x48   : > { %p1052_p11 = pnand %p1051_p6, %p1045_p8 }
  0x4a   : > { %1055 = shalt.err (!%p1052_p11)
}
  0x4b   : > { %934 = dma.hbm_to_vmem [thread:$0]  (!%p1267_p7), %s1342_s23, 256, %s1346_s30, %s1273_s7, %s1177_s26, %s1177_s26, %s1178_s27  }
  0x4c   : > { %p1527_p9 = scmp.eq.s32.totalorder %s1306_s8, 0  ;;  %p1528_p10 = pneg %p1333_p13 }
  0x4d   : > { %s1056_s21 = scalar_lea.hbm %s1514_s1, 640 }
  0x4e   : > { %p1381_p1 = pnand %p1528_p10, %p1527_p9  ;;  %p1057_p5 = scmp.ne.s32.totalorder %s1514_s1, %s1056_s21 }
  0x4f   : > { %p1063_p12 = scmp.lt.u32.totalorder %s1056_s21, %s1514_s1 }
  0x50   : > { %p1058_p8 = pneg %p1381_p1 }
  0x52   : > { %p1059_p7 = pnand %p1058_p8, %p1057_p5 }
  0x54   : > { %p1060_p2 = pneg %p1059_p7 }
  0x56   : > { %p1065_p0 = pnand %p1063_p12, %p1060_p2 }
  0x58   : > { %1068 = shalt.err (!%p1065_p0)
}
  0x59   : > { %s1069_s23 = scalar_lea.vmem %s153_s20, 640  ;;  %p1077_p11 = scmp.lt.s32.totalorder %s153_s20, %s153_s20 }
  0x5a   : > { %p1070_p4 = scmp.ne.s32.totalorder %s153_s20, %s1069_s23  ;;  %p1078_p9 = scmp.lt.s32.totalorder %s1069_s23, %s1069_s23 }
  0x5c   : > { %p1072_p3 = pnand %p1070_p4, %p1058_p8  ;;  %p1079_p10 = por %p1078_p9, %p1077_p11 }
  0x5e   : > { %p1073_p6 = pneg %p1072_p3 }
  0x60   : > { %p1080_p13 = pnand %p1079_p10, %p1073_p6 }
  0x62   : > { %1083 = shalt.err (!%p1080_p13)
}
  0x63   : > { %927 = dma.hbm_to_vmem [thread:$0]  (!%p1381_p1), %s1514_s1, 640, %s153_s20, [#allocation6], %s1177_s26, %s1177_s26, %s1178_s27  }
  0x64   : > { %p1530_p5 = scmp.ne.s32.totalorder %s1526_s11, 0 }
  0x65   : > { %s215_s19 = sand.u32 (!%p1530_p5), 1, %s1306_s8   ;;  %s1408_s5 = sand.u32 (!%p1530_p5), 1, %s1158_s13  }
  0x66   : > { %213 = sbr.rel (%p1530_p5) target bundleno = 370 (0x172), region = 32  ;;  %s766_s21 = sshll.u32 (!%p1530_p5), %s1408_s5, 6 }
  0x67   : > { %s216_s25 = scalar_lea.sflag (!%p1530_p5), [#allocation3], %s215_s19  ;;  %s1413_s22 = scalar_lea.vmem (!%p1530_p5), [#allocation2], %s766_s21 }
  0x68   : > { %p1531_p13 = scmp.ne.s32.totalorder (!%p1530_p5), %s1523_s10, 0 }
  0x6d   : > { %1137 = dma.done.wait (%p1531_p13), %s216_s25, 1024  }
  0x6e   : > { %1139 = vsyncadd (%p1531_p13), %s216_s25, 4294966272  ;;  %p1532_p1 = scmp.eq.s32.totalorder %s1306_s8, 0 }
  0x70   : > { %1141 = dma.done.wait (%p1532_p1), [#allocation6], 640   ;;  %p1533_p8 = pmov %p1532_p1 }
  0x71   : > { %s768_s26 = sshll.u32 %s1408_s5, 4 }
  0x72   : > { %1143 = vsyncadd (%p1533_p8), [#allocation6], 4294966656  ;;  %s1424_s27 = scalar_lea.vmem [#allocation7], %s768_s26 }
  0x73   : > { %1145 = dma.done.wait (%p1531_p13), %s216_s25, 256  }
  0x74   : > { %1147 = vsyncadd (%p1531_p13), %s216_s25, 4294967040  ;;  %vm271_vm0 = vcmask 285696   ;;  %v262_v0 = vld [vmem:[#allocation5] sm:$0xff]  ;;  %v263_v1 = vld [vmem:[#allocation5 + $0x8] sm:$0xff]  ;;  %vm278_vm1 = vcmask 1042432   ;;  %s259_s8 = scalar_lea.vmem [#allocation8], %s766_s21 }
  0x75   : > { %v264_v2 = vld [vmem:[#allocation5 + $0x10] sm:$0xff]  ;;  %v882_v3 = vpack.c.bf16 %v263_v1, %v262_v0  ;;  %v265_v4 = vld [vmem:[#allocation5 + $0x18] sm:$0xff]  ;;  %v269_v5 = vld [vmem:[%s1413_s22] sm:$0xff]  ;;  %s637_s10 = sshll.u32 %s259_s8, 4  ;;  %s801_s11 = sshll.u32 %s1166_s15, 10  ;;  %s1459_s10 = int_to_ptr.vmem [resolvable:$true] %s637_s10 }
  0x76   : > { %v886_v6 = vpack.c.bf16 %v265_v4, %v264_v2  ;;  %840 = vmatprep.mubr.msk.f32.mxu0 %vm271_vm0, %v269_v5  ;;  %v773_v7 = vld [vmem:[%s1413_s22 + $0x10] sm:$0xff]  ;;  %v266_v8 = vld [vmem:[#allocation5 + $0x20] sm:$0x7]  ;;  %v270_v9 = vld [vmem:[%s1413_s22 + $0x8] sm:$0xff]  ;;  %s1464_s7 = scalar_lea.hbm %s1516_s3, %s801_s11  ;;  %s621_s15 = scalar_lea.sflag [#allocation4], %s1408_s5 }
  0x77   : > { %883 = vmatprep.subr.bf16.mxu0 %v882_v3  ;;  %891 = vmatprep.subr.bf16.mxu1 %v882_v3  ;;  %v774_v10 = vld [vmem:[%s1413_s22 + $0x18] sm:$0xff]  ;;  %v780_v11 = vld [vmem:[%s1413_s22 + $0x20] sm:$0xff]  ;;  %v787_v12 = vld [vmem:[%s1413_s22 + $0x30] sm:$0xff]  ;;  %s1084_s30 = scalar_lea.vmem %s1459_s10, 1024  ;;  %p1534_p2 = scmp.ne.s32.totalorder %s1524_s29, 0 }
  0x78   : > { %885 = vmatpush3.bf16.msra.mxu0 %v882_v3  ;;  %893 = vmatpush3.bf16.msra.mxu1 %v882_v3  ;;  %v781_v13 = vld [vmem:[%s1413_s22 + $0x28] sm:$0xff]  ;;  %v788_v14 = vld [vmem:[%s1413_s22 + $0x38] sm:$0xff]  ;;  %v268_v15 = vld [vmem:[%s1424_s27 + $0x8] sm:$0xff]  ;;  %p1085_p7 = scmp.ne.s32.totalorder %s1459_s10, %s1084_s30  ;;  %s1181_s23 = smov [#allocation8]  }
  0x79   : > { %887 = vmatprep.subr.bf16.mxu0 %v886_v6  ;;  %895 = vmatprep.subr.bf16.mxu1 %v886_v6  ;;  %v267_v16 = vld [vmem:[%s1424_s27] sm:$0xff]  ;;  %s1088_s9 = sshll.u32 %s1181_s23, 4  ;;  %s1089_s9 = int_to_ptr.vmem [resolvable:$false] %s1088_s9 }
  0x7a   : > { %853 = vmatprep.mubr.msk.f32.mxu1 %vm271_vm0, %v773_v7  ;;  %p1086_p12 = pnand %p1085_p7, %p1534_p2  ;;  %s1090_s6 = scalar_lea.vmem %s1089_s9, 2048 }
  0x7b   : > { %p1091_p4 = scmp.lt.s32.totalorder %s1459_s10, %s1089_s9  ;;  %p1092_p3 = scmp.lt.s32.totalorder %s1090_s6, %s1084_s30 }
  0x7c   : > { %889 = vmatpush3.bf16.msra.mxu0 %v886_v6  ;;  %897 = vmatpush3.bf16.msra.mxu1 %v886_v6  ;;  %p1087_p0 = pneg %p1086_p12 }
  0x7d   : > { %838 = vmatprep.subr.msk.mxu0 %vm278_vm1, %v266_v8  ;;  %851 = vmatprep.subr.msk.mxu1 %vm278_vm1, %v266_v8  ;;  %p1093_p6 = por %p1092_p3, %p1091_p4 }
  0x7f   : > { %p1094_p11 = pnand %p1093_p6, %p1087_p0 }
  0x80   : > { %839 = vmatpush3.msk.msra.mxu0 %vm278_vm1, %v266_v8  ;;  %852 = vmatpush3.msk.msra.mxu1 %vm278_vm1, %v266_v8 }
  0x81   : > { %841 = vmatmul.mubr.msk.f32.vlgmr.msra.gmra.mrb[0].mxu0 %vm271_vm0, %v270_v9  ;;  %854 = vmatmul.mubr.msk.f32.vlgmr.msra.gmra.mrb[0].mxu1 %vm271_vm0, %v774_v10 }
  0x82   : > { %899 = vmatprep.subr.bf16.mxu0 %v882_v3  ;;  %907 = vmatprep.subr.bf16.mxu1 %v882_v3 }
  0x83   : > { %901 = vmatpush3.bf16.msra.mxu0 %v882_v3  ;;  %909 = vmatpush3.bf16.msra.mxu1 %v882_v3 }
  0x84   : > { %903 = vmatprep.subr.bf16.mxu0 %v886_v6  ;;  %911 = vmatprep.subr.bf16.mxu1 %v886_v6 }
  0x85   : > { %866 = vmatprep.mubr.msk.f32.mxu0 %vm271_vm0, %v780_v11  ;;  %879 = vmatprep.mubr.msk.f32.mxu1 %vm271_vm0, %v787_v12 }
  0x87   : > { %905 = vmatpush3.bf16.msra.mxu0 %v886_v6  ;;  %913 = vmatpush3.bf16.msra.mxu1 %v886_v6 }
  0x88   : > { %864 = vmatprep.subr.msk.mxu0 %vm278_vm1, %v266_v8  ;;  %877 = vmatprep.subr.msk.mxu1 %vm278_vm1, %v266_v8 }
  0x8b   : > { %865 = vmatpush3.msk.msra.mxu0 %vm278_vm1, %v266_v8  ;;  %878 = vmatpush3.msk.msra.mxu1 %vm278_vm1, %v266_v8 }
  0x8c   : > { %867 = vmatmul.mubr.msk.f32.vlgmr.msra.gmra.mrb[2].mxu0 %vm271_vm0, %v781_v13  ;;  %880 = vmatmul.mubr.msk.f32.vlgmr.msra.gmra.mrb[2].mxu1 %vm271_vm0, %v788_v14 }
 0x154   : > { %v842_v17 = vpop.f32.mrb[0].mxu0  ;;  %v855_v18 = vpop.f32.mrb[0].mxu1 }
 0x155   : > { %v354_v19 = vadd.f32 %v842_v17, %v268_v15  ;;  %v440_v20 = vadd.f32 %v855_v18, %v268_v15  ;;  %v348_v21 = vpop.f32.mrb[1].mxu0  ;;  %v434_v22 = vpop.f32.mrb[1].mxu1 }
 0x156   : > { %v349_v23 = vadd.f32 %v348_v21, %v267_v16  ;;  %v435_v24 = vadd.f32 %v434_v22, %v267_v16 }
 0x157   : > { %358 = vst [vmem:[%s259_s8 + $0x8] sm:$0xff] %v354_v19  ;;  %779 = vst [vmem:[%s259_s8 + $0x18] sm:$0xff] %v440_v20 }
 0x158   : > { %357 = vst [vmem:[%s259_s8] sm:$0xff] %v349_v23  ;;  %778 = vst [vmem:[%s259_s8 + $0x10] sm:$0xff] %v435_v24 }
 0x15f   : > { %v868_v25 = vpop.f32.mrb[2].mxu0  ;;  %v881_v26 = vpop.f32.mrb[2].mxu1 }
 0x160   : > { %v527_v27 = vadd.f32 %v868_v25, %v268_v15  ;;  %v614_v28 = vadd.f32 %v881_v26, %v268_v15  ;;  %v521_v29 = vpop.f32.mrb[3].mxu0  ;;  %v608_v30 = vpop.f32.mrb[3].mxu1 }
 0x161   : > { %v522_v31 = vadd.f32 %v521_v29, %v267_v16  ;;  %v609_v32 = vadd.f32 %v608_v30, %v267_v16 }
 0x162   : > { %786 = vst [vmem:[%s259_s8 + $0x28] sm:$0xff] %v527_v27  ;;  %793 = vst [vmem:[%s259_s8 + $0x38] sm:$0xff] %v614_v28 }
 0x163   : > { %785 = vst [vmem:[%s259_s8 + $0x20] sm:$0xff] %v522_v31  ;;  %792 = vst [vmem:[%s259_s8 + $0x30] sm:$0xff] %v609_v32 }
 0x164   : > { %1097 = shalt.err (!%p1094_p11)
}
 0x165   : > { %s1098_s19 = scalar_lea.hbm %s1464_s7, 1024  ;;  %s1102_s22 = scalar_lea.hbm %s1516_s3, 2048 }
 0x166   : > { %p1099_p9 = scmp.ne.s32.totalorder %s1464_s7, %s1098_s19  ;;  %p1103_p13 = scmp.lt.u32.totalorder %s1464_s7, %s1516_s3 }
 0x167   : > { %p1104_p1 = scmp.lt.u32.totalorder %s1102_s22, %s1098_s19  ;;  %p1106_p7 = scmp.lt.u32.totalorder %s1098_s19, %s1464_s7 }
 0x168   : > { %p1100_p10 = pnand %p1099_p9, %p1534_p2 }
 0x169   : > { %p1105_p8 = por %p1104_p1, %p1103_p13 }
 0x16a   : > { %p1101_p5 = pneg %p1100_p10 }
 0x16b   : > { %p1107_p12 = por %p1106_p7, %p1105_p8 }
 0x16d   : > { %p1108_p0 = pnand %p1107_p12, %p1101_p5 }
 0x16f   : > { %1111 = shalt.err (!%p1108_p0)
}
 0x170   : > { %s1182_s8 = smov 128   ;;  %s1183_s11 = smov 8  }
 0x171   : > { %922 = dma.vmem_to_hbm [thread:$0]  (%p1534_p2), %s1459_s10, 1024, %s1464_s7, %s621_s15, %s1182_s8, %s1182_s8, %s1183_s11  }
 0x172 PF: > { %s652_s20 = sand.u32 1, %s1154_s12   ;;  %p1535_p4 = scmp.ne.s32.totalorder %s1525_s4, 0 }
 0x173   : > { %p1536_p3 = scmp.ge.s32.totalorder %s1174_s17, 2  ;;  %s653_s28 = scalar_lea.sflag [#allocation4], %s652_s20 }
 0x175   : > { %p936_p6 = pnand %p1536_p3, %p1535_p4 }
 0x177   : > { %1149 = dma.done.wait (!%p936_p6), %s653_s28, 1024  }
 0x178   : > { %1151 = vsyncadd (!%p936_p6), %s653_s28, 4294966272  ;;  %s20_s17 = sadd.s32 1, %s1174_s17   ;;  %s1537_s12 = smov %s1158_s13 }
 0x179   : > { %p17_p11 = scmp.ge.s32.totalorder %s20_s17, 4   ;;  %s1538_s13 = smov %s1162_s14 }
 0x17a   : > { %s1539_s14 = smov %s1255_s24  ;;  %s1540_s15 = smov %s1170_s16 }
 0x17b   : > { %s1541_s16 = smov %s1543_s18  ;;  %19 = sbr.rel (!%p17_p11) target bundleno = 7 (0x7), region = 98 }
 0x182   :  { %658 = vsyncpa [#allocation3], 1 }
 0x183   :  { %660 = vsyncpa [#allocation3 + $0x1], 1 }
 0x184   :  { %661 = vsyncpa [#allocation6], 1 }
 0x185   :  { %662 = vsyncpa [#allocation4], 1 }
 0x186   :  { %664 = vsyncpa [#allocation4 + $0x1], 1 }

</bundles_post_ra>
